<compile_context>
chip_gen: v6e
topology: v6e:2x2x1
jax: 0.10.0
libtpu: 0.0.40
codegen_flags: <defaults>
</compile_context>

<pallas_src>
import functools
import math

import jax
import jax.numpy as jnp
from jax import lax
from jax.experimental import pallas as pl
from jax.experimental.pallas import tpu as pltpu


# ----------------------------- Fused kernel (per batch element) -------------------------
def _cross_attention_kernel(lat_ref, inp_ref, wq_ref, wkv_ref, wo_ref, bo_ref,
                            o_ref, *, nheads, head_dim):
    lat = lat_ref[0]                         # (L, latent_dim)
    inp = inp_ref[0]                         # (S, input_dim)

    # Full-width projections on the MXU.  1/sqrt(head_dim) is pre-folded into wq.
    q = jnp.dot(lat, wq_ref[...], preferred_element_type=jnp.float32)    # (L, latent_dim)
    kv = jnp.dot(inp, wkv_ref[...], preferred_element_type=jnp.float32)  # (S, 2*latent_dim)
    wo = wo_ref[...]                                                     # (latent_dim, latent_dim)

    two_dh = 2 * head_dim
    out = None
    for h in range(nheads):                  # static unrolled loop over heads
        q_h = q[:, h * head_dim:(h + 1) * head_dim]                 # (L, Dh)
        k_h = kv[:, h * two_dh: h * two_dh + head_dim]              # (S, Dh)
        v_h = kv[:, h * two_dh + head_dim:(h + 1) * two_dh]         # (S, Dh)

        # Contract last dims of both operands -> no transposed K copy.
        scores = lax.dot_general(
            q_h, k_h,
            dimension_numbers=(((1,), (1,)), ((), ())),
            preferred_element_type=jnp.float32)                     # (L, S)

        m = jnp.max(scores, axis=-1, keepdims=True)
        e = jnp.exp(scores - m)
        denom = jnp.sum(e, axis=-1, keepdims=True)
        weights = e * pl.reciprocal(denom, approx=True)             # softmax over keys (EUP)

        attn_h = jnp.dot(weights, v_h, preferred_element_type=jnp.float32)   # (L, Dh)

        # Output Linear fused per head: concat(attn) @ Wo^T == sum_h attn_h @ Wo^T[h*Dh:(h+1)*Dh].
        contrib = jnp.dot(attn_h, wo[h * head_dim:(h + 1) * head_dim, :],
                          preferred_element_type=jnp.float32)        # (L, latent_dim)
        out = contrib if out is None else out + contrib

    # Single lane-dense HBM store of the final (L, latent_dim) result.
    o_ref[0] = (out + bo_ref[...]).astype(o_ref.dtype)


# ----------------------------- One-time parameter preparation ---------------------------
def prepare_cross_attention_params(params, *, nheads):
    """Hoisted weight reshaping: PyTorch (out, in) weights -> kernel-ready layouts.

    Call once (outside the per-step forward); the returned arrays feed the kernel
    directly with no per-call transposes.
    """
    latent_dim = params["wq"].shape[0]
    head_dim = latent_dim // nheads
    return {
        # scale 1/sqrt(Dh) folded into Wq so no per-score multiply in-kernel
        "wq_scaled": params["wq"].T * (1.0 / math.sqrt(head_dim)),  # (latent_dim, latent_dim)
        "wkv_t": params["wkv"].T,                                   # (input_dim, 2*latent_dim)
        "wo_t": params["wo"].T,                                     # (latent_dim, latent_dim)
        "bo": params["bo"].reshape(1, latent_dim),                  # (1, latent_dim)
    }


# ----------------------------- Wrapper ---------------------------------------------------
def cross_attention_forward(latents, inputs, prepared, *, nheads):
    """Pallas implementation of CrossAttention.forward (single fused kernel)."""
    B, L, latent_dim = latents.shape
    _, S, input_dim = inputs.shape
    head_dim = latent_dim // nheads

    kernel = functools.partial(_cross_attention_kernel,
                               nheads=nheads, head_dim=head_dim)

    return pl.pallas_call(
        kernel,
        out_shape=jax.ShapeDtypeStruct((B, L, latent_dim), jnp.float32),
        grid=(B,),
        in_specs=[
            pl.BlockSpec((1, L, latent_dim), lambda b: (b, 0, 0)),       # latents
            pl.BlockSpec((1, S, input_dim), lambda b: (b, 0, 0)),        # inputs
            pl.BlockSpec((latent_dim, latent_dim), lambda b: (0, 0)),    # wq (scaled, T)
            pl.BlockSpec((input_dim, 2 * latent_dim), lambda b: (0, 0)), # wkv (T)
            pl.BlockSpec((latent_dim, latent_dim), lambda b: (0, 0)),    # wo (T)
            pl.BlockSpec((1, latent_dim), lambda b: (0, 0)),             # bias
        ],
        out_specs=pl.BlockSpec((1, L, latent_dim), lambda b: (b, 0, 0)),
        compiler_params=pltpu.CompilerParams(
            dimension_semantics=("parallel",),   # batch axis feeds both TCs on v7x
        ),
    )(latents, inputs, prepared["wq_scaled"], prepared["wkv_t"],
      prepared["wo_t"], prepared["bo"])

    # TODO(synk): for long sequences (large S/L) tile S as an inner "arbitrary"
    # grid axis with online softmax and set vmem_limit_bytes for v7x's 64 MiB VMEM.


# ----------------------------- Pure-JAX reference (for correctness) ---------------------
def cross_attention_reference(latents, inputs, params, *, nheads):
    B, L, latent_dim = latents.shape
    _, S, input_dim = inputs.shape
    H = nheads
    Dh = latent_dim // H

    q = latents @ params["wq"].T                              # (B, L, latent_dim)
    q = q.reshape(B, L, H, Dh).transpose(0, 2, 1, 3)          # (B, H, L, Dh)
    kv = inputs @ params["wkv"].T                             # (B, S, 2*latent_dim)
    kv = kv.reshape(B, S, H, 2 * Dh).transpose(0, 2, 1, 3)    # (B, H, S, 2*Dh)
    k, v = kv[..., :Dh], kv[..., Dh:]

    w = jnp.einsum("bhld,bhsd->bhls", q, k) / math.sqrt(Dh)
    w = jax.nn.softmax(w, axis=-1)
    o = jnp.einsum("bhls,bhsd->bhld", w, v)                   # (B, H, L, Dh)
    o = o.transpose(0, 2, 1, 3).reshape(B, L, latent_dim)
    return o @ params["wo"].T + params["bo"]


# ----------------------------- Main -------------------------------------------------------
if __name__ == "__main__":
    # Small shapes consistent with the module's forward.
    batch = 2
    latent_len = 8
    seq_len = 16
    latent_dim = 32
    input_dim = 16
    nheads = 4

    key = jax.random.PRNGKey(0)
    k_lat, k_inp, k_wq, k_wkv, k_wo, k_bo = jax.random.split(key, 6)

    latents = jax.random.normal(k_lat, (batch, latent_len, latent_dim), dtype=jnp.float32)
    inputs = jax.random.normal(k_inp, (batch, seq_len, input_dim), dtype=jnp.float32)

    # Deterministic parameter init (PyTorch (out, in) convention).
    params = {
        "wq": jax.random.normal(k_wq, (latent_dim, latent_dim), dtype=jnp.float32)
        * (1.0 / math.sqrt(latent_dim)),
        "wkv": jax.random.normal(k_wkv, (2 * latent_dim, input_dim), dtype=jnp.float32)
        * (1.0 / math.sqrt(input_dim)),
        "wo": jax.random.normal(k_wo, (latent_dim, latent_dim), dtype=jnp.float32)
        * (1.0 / math.sqrt(latent_dim)),
        "bo": jax.random.normal(k_bo, (latent_dim,), dtype=jnp.float32) * 0.01,
    }

    # One-time weight preparation (hoisted out of the forward path).
    prepared = prepare_cross_attention_params(params, nheads=nheads)

    out = cross_attention_forward(latents, inputs, prepared, nheads=nheads)
    out = jax.block_until_ready(out)

    # Reference at HIGHEST matmul precision: XLA's default f32 dot on TPU uses
    # low-precision bf16 MXU passes (~1e-2 rel error), which caused the previous
    # spurious mismatch against the f32-accumulating Pallas kernel.
    with jax.default_matmul_precision("highest"):
        ref = cross_attention_reference(latents, inputs, params, nheads=nheads)
    ref = jax.block_until_ready(ref)

    assert out.shape == (batch, latent_len, latent_dim)
    # Tolerance covers the EUP approximate reciprocal in softmax plus any residual
    # low-precision MXU pass on either side; genuine layout/head-mapping bugs are O(1).
    assert jnp.allclose(out, ref, atol=2e-2, rtol=2e-2), "Pallas output mismatch vs reference"

    print("KERNEL_OK")
</pallas_src>

<mosaic_0001>
module attributes {stable_mosaic.version = 11 : i64} {
  func.func @_cross_attention_kernel(%arg0: i32, %arg1: memref<1x8x32xf32, #tpu.memory_space<vmem>>, %arg2: memref<1x16x16xf32, #tpu.memory_space<vmem>>, %arg3: memref<32x32xf32, #tpu.memory_space<vmem>>, %arg4: memref<16x64xf32, #tpu.memory_space<vmem>>, %arg5: memref<32x32xf32, #tpu.memory_space<vmem>>, %arg6: memref<1x32xf32, #tpu.memory_space<vmem>>, %arg7: memref<1x8x32xf32, #tpu.memory_space<vmem>>) attributes {dimension_semantics = [#tpu.dimension_semantics<parallel>], iteration_bounds = array<i64: 2>, scalar_prefetch = 0 : i64, scratch_operands = 0 : i64, tpu.core_type = #tpu.core_type<tc>, window_params = [{transform_indices = @transform_0, window_bounds = array<i64: 1, 8, 32>}, {transform_indices = @transform_1, window_bounds = array<i64: 1, 16, 16>}, {pipeline_mode = #tpu.pipeline_mode<synchronous>, transform_indices = @transform_2, window_bounds = array<i64: 32, 32>}, {pipeline_mode = #tpu.pipeline_mode<synchronous>, transform_indices = @transform_3, window_bounds = array<i64: 16, 64>}, {pipeline_mode = #tpu.pipeline_mode<synchronous>, transform_indices = @transform_4, window_bounds = array<i64: 32, 32>}, {pipeline_mode = #tpu.pipeline_mode<synchronous>, transform_indices = @transform_5, window_bounds = array<i64: 1, 32>}, {transform_indices = @transform_6, window_bounds = array<i64: 1, 8, 32>}]} {
    %c0 = arith.constant 0 : index
    %c0_0 = arith.constant 0 : index
    %c0_1 = arith.constant 0 : index
    %0 = vector.load %arg1[%c0, %c0_0, %c0_1] : memref<1x8x32xf32, #tpu.memory_space<vmem>>, vector<1x8x32xf32>
    %1 = vector.shape_cast %0 : vector<1x8x32xf32> to vector<8x32xf32>
    %c0_2 = arith.constant 0 : index
    %c0_3 = arith.constant 0 : index
    %c0_4 = arith.constant 0 : index
    %2 = vector.load %arg2[%c0_2, %c0_3, %c0_4] : memref<1x16x16xf32, #tpu.memory_space<vmem>>, vector<1x16x16xf32>
    %3 = vector.shape_cast %2 : vector<1x16x16xf32> to vector<16x16xf32>
    %c0_5 = arith.constant 0 : index
    %c0_6 = arith.constant 0 : index
    %4 = vector.load %arg3[%c0_5, %c0_6] : memref<32x32xf32, #tpu.memory_space<vmem>>, vector<32x32xf32>
    %cst = arith.constant dense<0.000000e+00> : vector<8x32xf32>
    %5 = tpu.matmul %1, %4, %cst {dimension_numbers = #tpu.dot_dimension_numbers<[1], [0], [0], [1], [0, 0, 1, 1], [], []>} : vector<8x32xf32>, vector<32x32xf32>, vector<8x32xf32> -> vector<8x32xf32>
    %c0_7 = arith.constant 0 : index
    %c0_8 = arith.constant 0 : index
    %6 = vector.load %arg4[%c0_7, %c0_8] : memref<16x64xf32, #tpu.memory_space<vmem>>, vector<16x64xf32>
    %cst_9 = arith.constant dense<0.000000e+00> : vector<16x64xf32>
    %7 = tpu.matmul %3, %6, %cst_9 {dimension_numbers = #tpu.dot_dimension_numbers<[1], [0], [0], [1], [0, 0, 1, 1], [], []>} : vector<16x16xf32>, vector<16x64xf32>, vector<16x64xf32> -> vector<16x64xf32>
    %c0_10 = arith.constant 0 : index
    %c0_11 = arith.constant 0 : index
    %8 = vector.load %arg5[%c0_10, %c0_11] : memref<32x32xf32, #tpu.memory_space<vmem>>, vector<32x32xf32>
    %9 = vector.extract_strided_slice %5 {offsets = [0, 0], sizes = [8, 8], strides = [1, 1]} : vector<8x32xf32> to vector<8x8xf32>
    %10 = vector.extract_strided_slice %7 {offsets = [0, 0], sizes = [16, 8], strides = [1, 1]} : vector<16x64xf32> to vector<16x8xf32>
    %11 = vector.extract_strided_slice %7 {offsets = [0, 8], sizes = [16, 8], strides = [1, 1]} : vector<16x64xf32> to vector<16x8xf32>
    %cst_12 = arith.constant dense<0.000000e+00> : vector<8x16xf32>
    %12 = tpu.matmul %9, %10, %cst_12 {dimension_numbers = #tpu.dot_dimension_numbers<[1], [1], [0], [0], [0, 0, 1, 0], [], []>} : vector<8x8xf32>, vector<16x8xf32>, vector<8x16xf32> -> vector<8x16xf32>
    %cst_13 = arith.constant dense<0xFF800000> : vector<8xf32>
    %13 = vector.multi_reduction <maximumf>, %12, %cst_13 [1] : vector<8x16xf32> to vector<8xf32>
    %14 = vector.shape_cast %13 : vector<8xf32> to vector<8x1xf32>
    %15 = vector.broadcast %14 : vector<8x1xf32> to vector<8x16xf32>
    %16 = arith.subf %12, %15 : vector<8x16xf32>
    %17 = math.exp %16 : vector<8x16xf32>
    %cst_14 = arith.constant dense<0.000000e+00> : vector<8xf32>
    %18 = vector.multi_reduction <add>, %17, %cst_14 [1] : vector<8x16xf32> to vector<8xf32>
    %19 = vector.shape_cast %18 : vector<8xf32> to vector<8x1xf32>
    %20 = tpu.reciprocal %19 {approx = true} : vector<8x1xf32> -> vector<8x1xf32>
    %21 = vector.broadcast %20 : vector<8x1xf32> to vector<8x16xf32>
    %22 = arith.mulf %17, %21 : vector<8x16xf32>
    %cst_15 = arith.constant dense<0.000000e+00> : vector<8x8xf32>
    %23 = tpu.matmul %22, %11, %cst_15 {dimension_numbers = #tpu.dot_dimension_numbers<[1], [0], [0], [1], [0, 0, 1, 1], [], []>} : vector<8x16xf32>, vector<16x8xf32>, vector<8x8xf32> -> vector<8x8xf32>
    %24 = vector.extract_strided_slice %8 {offsets = [0, 0], sizes = [8, 32], strides = [1, 1]} : vector<32x32xf32> to vector<8x32xf32>
    %cst_16 = arith.constant dense<0.000000e+00> : vector<8x32xf32>
    %25 = tpu.matmul %23, %24, %cst_16 {dimension_numbers = #tpu.dot_dimension_numbers<[1], [0], [0], [1], [0, 0, 1, 1], [], []>} : vector<8x8xf32>, vector<8x32xf32>, vector<8x32xf32> -> vector<8x32xf32>
    %26 = vector.extract_strided_slice %5 {offsets = [0, 8], sizes = [8, 8], strides = [1, 1]} : vector<8x32xf32> to vector<8x8xf32>
    %27 = vector.extract_strided_slice %7 {offsets = [0, 16], sizes = [16, 8], strides = [1, 1]} : vector<16x64xf32> to vector<16x8xf32>
    %28 = vector.extract_strided_slice %7 {offsets = [0, 24], sizes = [16, 8], strides = [1, 1]} : vector<16x64xf32> to vector<16x8xf32>
    %cst_17 = arith.constant dense<0.000000e+00> : vector<8x16xf32>
    %29 = tpu.matmul %26, %27, %cst_17 {dimension_numbers = #tpu.dot_dimension_numbers<[1], [1], [0], [0], [0, 0, 1, 0], [], []>} : vector<8x8xf32>, vector<16x8xf32>, vector<8x16xf32> -> vector<8x16xf32>
    %cst_18 = arith.constant dense<0xFF800000> : vector<8xf32>
    %30 = vector.multi_reduction <maximumf>, %29, %cst_18 [1] : vector<8x16xf32> to vector<8xf32>
    %31 = vector.shape_cast %30 : vector<8xf32> to vector<8x1xf32>
    %32 = vector.broadcast %31 : vector<8x1xf32> to vector<8x16xf32>
    %33 = arith.subf %29, %32 : vector<8x16xf32>
    %34 = math.exp %33 : vector<8x16xf32>
    %cst_19 = arith.constant dense<0.000000e+00> : vector<8xf32>
    %35 = vector.multi_reduction <add>, %34, %cst_19 [1] : vector<8x16xf32> to vector<8xf32>
    %36 = vector.shape_cast %35 : vector<8xf32> to vector<8x1xf32>
    %37 = tpu.reciprocal %36 {approx = true} : vector<8x1xf32> -> vector<8x1xf32>
    %38 = vector.broadcast %37 : vector<8x1xf32> to vector<8x16xf32>
    %39 = arith.mulf %34, %38 : vector<8x16xf32>
    %cst_20 = arith.constant dense<0.000000e+00> : vector<8x8xf32>
    %40 = tpu.matmul %39, %28, %cst_20 {dimension_numbers = #tpu.dot_dimension_numbers<[1], [0], [0], [1], [0, 0, 1, 1], [], []>} : vector<8x16xf32>, vector<16x8xf32>, vector<8x8xf32> -> vector<8x8xf32>
    %41 = vector.extract_strided_slice %8 {offsets = [8, 0], sizes = [8, 32], strides = [1, 1]} : vector<32x32xf32> to vector<8x32xf32>
    %cst_21 = arith.constant dense<0.000000e+00> : vector<8x32xf32>
    %42 = tpu.matmul %40, %41, %cst_21 {dimension_numbers = #tpu.dot_dimension_numbers<[1], [0], [0], [1], [0, 0, 1, 1], [], []>} : vector<8x8xf32>, vector<8x32xf32>, vector<8x32xf32> -> vector<8x32xf32>
    %43 = arith.addf %25, %42 : vector<8x32xf32>
    %44 = vector.extract_strided_slice %5 {offsets = [0, 16], sizes = [8, 8], strides = [1, 1]} : vector<8x32xf32> to vector<8x8xf32>
    %45 = vector.extract_strided_slice %7 {offsets = [0, 32], sizes = [16, 8], strides = [1, 1]} : vector<16x64xf32> to vector<16x8xf32>
    %46 = vector.extract_strided_slice %7 {offsets = [0, 40], sizes = [16, 8], strides = [1, 1]} : vector<16x64xf32> to vector<16x8xf32>
    %cst_22 = arith.constant dense<0.000000e+00> : vector<8x16xf32>
    %47 = tpu.matmul %44, %45, %cst_22 {dimension_numbers = #tpu.dot_dimension_numbers<[1], [1], [0], [0], [0, 0, 1, 0], [], []>} : vector<8x8xf32>, vector<16x8xf32>, vector<8x16xf32> -> vector<8x16xf32>
    %cst_23 = arith.constant dense<0xFF800000> : vector<8xf32>
    %48 = vector.multi_reduction <maximumf>, %47, %cst_23 [1] : vector<8x16xf32> to vector<8xf32>
    %49 = vector.shape_cast %48 : vector<8xf32> to vector<8x1xf32>
    %50 = vector.broadcast %49 : vector<8x1xf32> to vector<8x16xf32>
    %51 = arith.subf %47, %50 : vector<8x16xf32>
    %52 = math.exp %51 : vector<8x16xf32>
    %cst_24 = arith.constant dense<0.000000e+00> : vector<8xf32>
    %53 = vector.multi_reduction <add>, %52, %cst_24 [1] : vector<8x16xf32> to vector<8xf32>
    %54 = vector.shape_cast %53 : vector<8xf32> to vector<8x1xf32>
    %55 = tpu.reciprocal %54 {approx = true} : vector<8x1xf32> -> vector<8x1xf32>
    %56 = vector.broadcast %55 : vector<8x1xf32> to vector<8x16xf32>
    %57 = arith.mulf %52, %56 : vector<8x16xf32>
    %cst_25 = arith.constant dense<0.000000e+00> : vector<8x8xf32>
    %58 = tpu.matmul %57, %46, %cst_25 {dimension_numbers = #tpu.dot_dimension_numbers<[1], [0], [0], [1], [0, 0, 1, 1], [], []>} : vector<8x16xf32>, vector<16x8xf32>, vector<8x8xf32> -> vector<8x8xf32>
    %59 = vector.extract_strided_slice %8 {offsets = [16, 0], sizes = [8, 32], strides = [1, 1]} : vector<32x32xf32> to vector<8x32xf32>
    %cst_26 = arith.constant dense<0.000000e+00> : vector<8x32xf32>
    %60 = tpu.matmul %58, %59, %cst_26 {dimension_numbers = #tpu.dot_dimension_numbers<[1], [0], [0], [1], [0, 0, 1, 1], [], []>} : vector<8x8xf32>, vector<8x32xf32>, vector<8x32xf32> -> vector<8x32xf32>
    %61 = arith.addf %43, %60 : vector<8x32xf32>
    %62 = vector.extract_strided_slice %5 {offsets = [0, 24], sizes = [8, 8], strides = [1, 1]} : vector<8x32xf32> to vector<8x8xf32>
    %63 = vector.extract_strided_slice %7 {offsets = [0, 48], sizes = [16, 8], strides = [1, 1]} : vector<16x64xf32> to vector<16x8xf32>
    %64 = vector.extract_strided_slice %7 {offsets = [0, 56], sizes = [16, 8], strides = [1, 1]} : vector<16x64xf32> to vector<16x8xf32>
    %cst_27 = arith.constant dense<0.000000e+00> : vector<8x16xf32>
    %65 = tpu.matmul %62, %63, %cst_27 {dimension_numbers = #tpu.dot_dimension_numbers<[1], [1], [0], [0], [0, 0, 1, 0], [], []>} : vector<8x8xf32>, vector<16x8xf32>, vector<8x16xf32> -> vector<8x16xf32>
    %cst_28 = arith.constant dense<0xFF800000> : vector<8xf32>
    %66 = vector.multi_reduction <maximumf>, %65, %cst_28 [1] : vector<8x16xf32> to vector<8xf32>
    %67 = vector.shape_cast %66 : vector<8xf32> to vector<8x1xf32>
    %68 = vector.broadcast %67 : vector<8x1xf32> to vector<8x16xf32>
    %69 = arith.subf %65, %68 : vector<8x16xf32>
    %70 = math.exp %69 : vector<8x16xf32>
    %cst_29 = arith.constant dense<0.000000e+00> : vector<8xf32>
    %71 = vector.multi_reduction <add>, %70, %cst_29 [1] : vector<8x16xf32> to vector<8xf32>
    %72 = vector.shape_cast %71 : vector<8xf32> to vector<8x1xf32>
    %73 = tpu.reciprocal %72 {approx = true} : vector<8x1xf32> -> vector<8x1xf32>
    %74 = vector.broadcast %73 : vector<8x1xf32> to vector<8x16xf32>
    %75 = arith.mulf %70, %74 : vector<8x16xf32>
    %cst_30 = arith.constant dense<0.000000e+00> : vector<8x8xf32>
    %76 = tpu.matmul %75, %64, %cst_30 {dimension_numbers = #tpu.dot_dimension_numbers<[1], [0], [0], [1], [0, 0, 1, 1], [], []>} : vector<8x16xf32>, vector<16x8xf32>, vector<8x8xf32> -> vector<8x8xf32>
    %77 = vector.extract_strided_slice %8 {offsets = [24, 0], sizes = [8, 32], strides = [1, 1]} : vector<32x32xf32> to vector<8x32xf32>
    %cst_31 = arith.constant dense<0.000000e+00> : vector<8x32xf32>
    %78 = tpu.matmul %76, %77, %cst_31 {dimension_numbers = #tpu.dot_dimension_numbers<[1], [0], [0], [1], [0, 0, 1, 1], [], []>} : vector<8x8xf32>, vector<8x32xf32>, vector<8x32xf32> -> vector<8x32xf32>
    %79 = arith.addf %61, %78 : vector<8x32xf32>
    %c0_32 = arith.constant 0 : index
    %c0_33 = arith.constant 0 : index
    %80 = vector.load %arg6[%c0_32, %c0_33] : memref<1x32xf32, #tpu.memory_space<vmem>>, vector<1x32xf32>
    %81 = vector.broadcast %80 : vector<1x32xf32> to vector<8x32xf32>
    %82 = arith.addf %79, %81 : vector<8x32xf32>
    %c0_34 = arith.constant 0 : index
    %c0_35 = arith.constant 0 : index
    %c0_36 = arith.constant 0 : index
    %83 = vector.load %arg7[%c0_34, %c0_35, %c0_36] : memref<1x8x32xf32, #tpu.memory_space<vmem>>, vector<1x8x32xf32>
    %84 = vector.shape_cast %83 : vector<1x8x32xf32> to vector<8x32xf32>
    %85 = vector.shape_cast %82 : vector<8x32xf32> to vector<1x8x32xf32>
    tpu.vector_store %arg7[%c0_34, %c0_35, %c0_36], %85 {strides = array<i32>} : memref<1x8x32xf32, #tpu.memory_space<vmem>>, vector<1x8x32xf32>,
    return
  }
  func.func @transform_0(%arg0: i32) -> (i32, i32, i32) {
    %c0_i32 = arith.constant 0 : i32
    %c0_i32_0 = arith.constant 0 : i32
    %c0_i32_1 = arith.constant 0 : i32
    return %arg0, %c0_i32, %c0_i32_0 : i32, i32, i32
  }
  func.func @transform_1(%arg0: i32) -> (i32, i32, i32) {
    %c0_i32 = arith.constant 0 : i32
    %c0_i32_0 = arith.constant 0 : i32
    %c0_i32_1 = arith.constant 0 : i32
    return %arg0, %c0_i32, %c0_i32_0 : i32, i32, i32
  }
  func.func @transform_2(%arg0: i32) -> (i32, i32) {
    %c0_i32 = arith.constant 0 : i32
    %c0_i32_0 = arith.constant 0 : i32
    %c0_i32_1 = arith.constant 0 : i32
    return %c0_i32, %c0_i32_0 : i32, i32
  }
  func.func @transform_3(%arg0: i32) -> (i32, i32) {
    %c0_i32 = arith.constant 0 : i32
    %c0_i32_0 = arith.constant 0 : i32
    %c0_i32_1 = arith.constant 0 : i32
    return %c0_i32, %c0_i32_0 : i32, i32
  }
  func.func @transform_4(%arg0: i32) -> (i32, i32) {
    %c0_i32 = arith.constant 0 : i32
    %c0_i32_0 = arith.constant 0 : i32
    %c0_i32_1 = arith.constant 0 : i32
    return %c0_i32, %c0_i32_0 : i32, i32
  }
  func.func @transform_5(%arg0: i32) -> (i32, i32) {
    %c0_i32 = arith.constant 0 : i32
    %c0_i32_0 = arith.constant 0 : i32
    %c0_i32_1 = arith.constant 0 : i32
    return %c0_i32, %c0_i32_0 : i32, i32
  }
  func.func @transform_6(%arg0: i32) -> (i32, i32, i32) {
    %c0_i32 = arith.constant 0 : i32
    %c0_i32_0 = arith.constant 0 : i32
    %c0_i32_1 = arith.constant 0 : i32
    return %arg0, %c0_i32, %c0_i32_0 : i32, i32, i32
  }
}

</mosaic_0001>

<bundles_post_ra>
// kernel: tpu_custom_call.1
= control target key start
LH: loop header
LB: loop body
LE: loop exit
PB: predicated region body
PF: predicated region fallthrough
CT: control target
= control target key end

     0   :  { %s2556_s0 = inlined_call_operand.hbm [shape: f32[2,8,32], index: 0, kind: input, shape index: {}]   ;;  %s2557_s1 = inlined_call_operand.hbm [shape: f32[2,16,16], index: 1, kind: input, shape index: {}]   ;;  %s2558_s2 = inlined_call_operand.hbm [shape: f32[32,32], index: 2, kind: input, shape index: {}]   ;;  %s2559_s3 = inlined_call_operand.hbm [shape: f32[16,64], index: 3, kind: input, shape index: {}]   ;;  %s2560_s4 = inlined_call_operand.hbm [shape: f32[32,32], index: 4, kind: input, shape index: {}]   ;;  %s2561_s5 = inlined_call_operand.vmem [shape: f32[1,32], index: 5, kind: input, shape index: {}]   ;;  %s2562_s6 = inlined_call_operand.hbm [shape: f32[2,8,32], index: 6, kind: output, shape index: {}]  }
   0x1   :  { %2569 = sst [smem:[#allocation17_spill]] %s2558_s2 }
   0x2   :  { %11 = vsyncpa [#allocation3], 0 }
   0x3   :  { %13 = vsyncpa [#allocation3 + $0x1], 0 }
   0x4   :  { %14 = vsyncpa [#allocation6], 0 }
   0x5   :  { %16 = vsyncpa [#allocation6 + $0x1], 0 }
   0x6   :  { %17 = vsyncpa [#allocation9], 0 }
   0x7   :  { %18 = vsyncpa [#allocation4], 0 }
   0x8   :  { %20 = vsyncpa [#allocation4 + $0x1], 0  ;;  %s2198_s21 = smov 0   ;;  %s2200_s22 = smov 0  }
   0x9   :  { %s2202_s23 = smov 0   ;;  %s2204_s24 = smov 0  }
   0xa LB: > { %s2219_s25 = sadd.s32 4294967295, %s2144_s24   ;;  %s1643_s26 = sadd.s32 4294967294, %s2144_s24   ;;  %s2144_s24 = sphi %s2204_s24, %s2591_s24   ;;  %s2140_s23 = sphi %s2202_s23, %s2590_s23   ;;  %s2136_s22 = sphi %s2200_s22, %s2589_s22   ;;  %s2132_s21 = sphi %s2198_s21, %s2588_s21  }
   0xb   : > { %p46_p0 = scmp.ne.s32.totalorder %s2136_s22, %s2132_s21  ;;  %p2563_p1 = scmp.eq.s32.totalorder %s2219_s25, 0 }
   0xc   : > { %p180_p2 = scmp.eq.s32.totalorder %s2219_s25, 1  ;;  %p186_p3 = scmp.eq.s32.totalorder %s1643_s26, 1 }
   0xd   : > { %p2228_p4 = por %p2563_p1, %p46_p0  ;;  %p1644_p5 = scmp.ge.s32.totalorder %s2144_s24, 1 }
   0xe   : > { %p2233_p6 = por %p186_p3, %p46_p0  ;;  %p193_p7 = scmp.lt.s32.totalorder %s2144_s24, 3 }
   0xf   : > { %s2570_s27 = scalar_select %p2228_p4, 1, 0 }
  0x10   : > { %s2571_s28 = scalar_select %p2233_p6, 1, 0 }
  0x11   : > { %p2238_p8 = pnand %p1644_p5, %p193_p7  ;;  %s2146_s30 = smov [#allocation7]  }
  0x12   : > { %s205_s7 = sshll.u32 %s2146_s30, 4  ;;  %s2147_s9 = smov [#allocation8]   ;;  %s206_s7 = int_to_ptr.vmem [resolvable:$true] %s205_s7 }
  0x13   : > { %s2572_s29 = scalar_select %p2238_p8, 1, 0 }
  0x14   : > { %p1843_p9 = pneg %p2238_p8  ;;  %s218_s10 = sshll.u32 %s2147_s9, 4  ;;  %s219_s10 = int_to_ptr.vmem [resolvable:$true] %s218_s10 }
  0x15   : > { %s2148_s11 = smov [#allocation10]   ;;  %s1945_s13 = scalar_lea.vmem %s206_s7, 512 }
  0x16   : > { %p2247_p11 = pnand %p1843_p9, %p2563_p1  ;;  %s231_s12 = sshll.u32 %s2148_s11, 4  ;;  %s232_s12 = int_to_ptr.vmem [resolvable:$true] %s231_s12 }
  0x17   : > { %p1946_p13 = scmp.ne.s32.totalorder %s206_s7, %s1945_s13  ;;  %p1953_p5 = scmp.lt.s32.totalorder %s206_s7, %s206_s7 }
  0x18   : > { %p1936_p12 = pneg %p2247_p11  ;;  %p1954_p7 = scmp.lt.s32.totalorder %s1945_s13, %s1945_s13 }
  0x1a   : > { %p1948_p0 = pnand %p1946_p13, %p1936_p12  ;;  %p1955_p9 = por %p1954_p7, %p1953_p5 }
  0x1c   : > { %p1949_p3 = pneg %p1948_p0 }
  0x1e   : > { %p1956_p10 = pnand %p1955_p9, %p1949_p3 }
  0x20   : > { %1959 = shalt.err (!%p1956_p10)
}
  0x21   : > { %s2564_s14 = smov 128   ;;  %s2565_s15 = smov 8  }
  0x22   : > { %s2574_s2 = sld [smem:[#allocation17_spill]]  ;;  %s1971_s18 = scalar_lea.vmem %s219_s10, 256 }
  0x23   : > { %p1972_p13 = scmp.ne.s32.totalorder %s219_s10, %s1971_s18  ;;  %p1979_p3 = scmp.lt.s32.totalorder %s219_s10, %s219_s10 }
  0x24   : > { %p1980_p10 = scmp.lt.s32.totalorder %s1971_s18, %s1971_s18 }
  0x25   : > { %p1974_p0 = pnand %p1972_p13, %p1936_p12 }
  0x26   : > { %p1981_p7 = por %p1980_p10, %p1979_p3 }
  0x27   : > { %p1975_p5 = pneg %p1974_p0 }
  0x28   : > { %1846 = dma.hbm_to_vmem [thread:$0]  (!%p2247_p11), %s2574_s2, 512, %s206_s7, [#allocation6], %s2564_s14, %s2564_s14, %s2565_s15  }
  0x29   : > { %p1982_p9 = pnand %p1981_p7, %p1975_p5 }
  0x2b   : > { %1985 = shalt.err (!%p1982_p9)
}
  0x2c   : > { %1849 = dma.hbm_to_vmem [thread:$0]  (!%p2247_p11), %s2559_s3, 256, %s219_s10, [#allocation9], %s2564_s14, %s2564_s14, %s2565_s15  }
  0x2d   : > { %s1997_s26 = scalar_lea.vmem %s232_s12, 512  ;;  %p2005_p3 = scmp.lt.s32.totalorder %s232_s12, %s232_s12 }
  0x2e   : > { %p1998_p1 = scmp.ne.s32.totalorder %s232_s12, %s1997_s26  ;;  %p2006_p5 = scmp.lt.s32.totalorder %s1997_s26, %s1997_s26 }
  0x30   : > { %p2000_p13 = pnand %p1998_p1, %p1936_p12  ;;  %p2007_p10 = por %p2006_p5, %p2005_p3 }
  0x32   : > { %p2001_p0 = pneg %p2000_p13 }
  0x34   : > { %p2008_p7 = pnand %p2007_p10, %p2001_p0 }
  0x36   : > { %2011 = shalt.err (!%p2008_p7)
}
  0x37   : > { %1852 = dma.hbm_to_vmem [thread:$0]  (!%p2247_p11), %s2560_s4, 512, %s232_s12, [#allocation9], %s2564_s14, %s2564_s14, %s2565_s15  }
  0x38   : > { %s2287_s9 = sadd.s32 1, %s2144_s24   ;;  %s33_s10 = sadd.s32 1, %s2140_s23 }
  0x39   : > { %s30_s8 = ssub.s32 %s2144_s24, %s2287_s9  ;;  %p40_p12 = scmp.ne.s32.totalorder %s2140_s23, %s2136_s22 }
  0x3a   : > { %p31_p1 = scmp.eq.s32.totalorder %s30_s8, 0  ;;  %p41_p9 = scmp.eq.s32.totalorder %s2144_s24, 0 }
  0x3b   : > { %p1867_p13 = scmp.lt.s32.totalorder %s2144_s24, 2  ;;  %p2301_p3 = por %p180_p2, %p40_p12 }
  0x3c   : > { %s2297_s11 = scalar_select %p31_p1, %s2140_s23, %s33_s10  }
  0x3d   : > { %p42_p0 = por %p41_p9, %p40_p12  ;;  %s2306_s16 = sand.u32 1, %s2140_s23  }
  0x3e   : > { %s2575_s13 = scalar_select %p2301_p3, 1, 0 }
  0x3f   : > { %s1650_s12 = sshll.u32 %s2144_s24, 7  ;;  %s1649_s17 = sshll.u32 %s2306_s16, 3 }
  0x40   : > { %s2313_s20 = scalar_lea.hbm %s2556_s0, %s1650_s12  ;;  %s252_s26 = scalar_lea.vmem [#allocation2], %s1649_s17 }
  0x41   : > { %s259_s30 = sshll.u32 %s252_s26, 4  ;;  %p2315_p2 = pnand %p1867_p13, %p42_p0  ;;  %s260_s30 = int_to_ptr.vmem [resolvable:$true] %s259_s30 }
  0x42   : > { %s1651_s8 = sshll.u32 %s2306_s16, 4  ;;  %s249_s10 = scalar_lea.sflag [#allocation3], %s2306_s16 }
  0x43   : > { %s2012_s14 = scalar_lea.hbm %s2313_s20, 128  ;;  %p2014_p5 = pneg %p2315_p2 }
  0x44   : > { %p2013_p11 = scmp.ne.s32.totalorder %s2313_s20, %s2012_s14  ;;  %s2017_s18 = scalar_lea.hbm %s2556_s0, 256 }
  0x45   : > { %p2018_p1 = scmp.lt.s32.totalorder %s2313_s20, %s2556_s0  ;;  %p2019_p12 = scmp.lt.s32.totalorder %s2017_s18, %s2012_s14 }
  0x46   : > { %p2015_p10 = pnand %p2014_p5, %p2013_p11 }
  0x47   : > { %p2020_p9 = por %p2019_p12, %p2018_p1 }
  0x48   : > { %p2016_p7 = pneg %p2015_p10 }
  0x4a   : > { %p2021_p13 = pnand %p2020_p9, %p2016_p7 }
  0x4c   : > { %2024 = shalt.err (!%p2021_p13)
}
  0x4d   : > { %s2025_s16 = scalar_lea.vmem %s260_s30, 128  ;;  %s2151_s15 = smov [#allocation2]  }
  0x4e   : > { %p2026_p0 = scmp.ne.s32.totalorder %s260_s30, %s2025_s16  ;;  %s2030_s2 = sshll.u32 %s2151_s15, 4  ;;  %s2031_s2 = int_to_ptr.vmem [resolvable:$false] %s2030_s2 }
  0x4f   : > { %s2032_s12 = scalar_lea.vmem %s2031_s2, 256  ;;  %p2033_p10 = scmp.lt.s32.totalorder %s260_s30, %s2031_s2 }
  0x50   : > { %p2028_p6 = pnand %p2026_p0, %p2014_p5  ;;  %p2034_p3 = scmp.lt.s32.totalorder %s2032_s12, %s2025_s16 }
  0x52   : > { %p2029_p11 = pneg %p2028_p6  ;;  %p2035_p4 = por %p2034_p3, %p2033_p10 }
  0x54   : > { %p2036_p8 = pnand %p2035_p4, %p2029_p11 }
  0x56   : > { %2039 = shalt.err (!%p2036_p8)
}
  0x57   : > { %1856 = dma.hbm_to_vmem [thread:$0]  (!%p2315_p2), %s2313_s20, 128, %s260_s30, %s249_s10  }
  0x58   : > { %s270_s14 = scalar_lea.vmem [#allocation5], %s1651_s8  ;;  %s266_s18 = sand.u32 1, %s2144_s24  }
  0x59   : > { %s277_s17 = sshll.u32 %s270_s14, 4  ;;  %s1689_s15 = sshll.u32 %s2144_s24, 8  ;;  %s2342_s17 = int_to_ptr.vmem [resolvable:$true] %s277_s17 }
  0x5a   : > { %s2348_s2 = scalar_lea.hbm %s2557_s1, %s1689_s15  ;;  %s267_s16 = scalar_lea.sflag [#allocation6], %s266_s18 }
  0x5b   : > { %s2040_s12 = scalar_lea.hbm %s2348_s2, 256  ;;  %s2045_s8 = scalar_lea.hbm %s2557_s1, 512 }
  0x5c   : > { %p2041_p4 = scmp.ne.s32.totalorder %s2348_s2, %s2040_s12  ;;  %p2046_p3 = scmp.lt.s32.totalorder %s2348_s2, %s2557_s1 }
  0x5d   : > { %p2047_p7 = scmp.lt.s32.totalorder %s2045_s8, %s2040_s12 }
  0x5e   : > { %p2043_p6 = pnand %p2041_p4, %p2014_p5 }
  0x5f   : > { %p2048_p1 = por %p2047_p7, %p2046_p3 }
  0x60   : > { %p2044_p8 = pneg %p2043_p6 }
  0x62   : > { %p2049_p12 = pnand %p2048_p1, %p2044_p8 }
  0x64   : > { %2052 = shalt.err (!%p2049_p12)
}
  0x65   : > { %s2053_s18 = scalar_lea.vmem %s2342_s17, 256  ;;  %s2152_s15 = smov [#allocation5]  }
  0x66   : > { %p2054_p9 = scmp.ne.s32.totalorder %s2342_s17, %s2053_s18  ;;  %s2058_s19 = sshll.u32 %s2152_s15, 4  ;;  %s2059_s19 = int_to_ptr.vmem [resolvable:$false] %s2058_s19 }
  0x67   : > { %s2060_s26 = scalar_lea.vmem %s2059_s19, 512  ;;  %p2061_p11 = scmp.lt.s32.totalorder %s2342_s17, %s2059_s19 }
  0x68   : > { %p2056_p13 = pnand %p2054_p9, %p2014_p5  ;;  %p2062_p10 = scmp.lt.s32.totalorder %s2060_s26, %s2053_s18 }
  0x6a   : > { %p2057_p0 = pneg %p2056_p13  ;;  %p2063_p4 = por %p2062_p10, %p2061_p11 }
  0x6c   : > { %p2064_p6 = pnand %p2063_p4, %p2057_p0 }
  0x6e   : > { %2067 = shalt.err (!%p2064_p6)
}
  0x6f   : > { %s2577_s12 = smov 8   ;;  %s2578_s20 = smov 128  }
  0x70   : > { %1859 = dma.hbm_to_vmem [thread:$0]  (!%p2315_p2), %s2348_s2, 256, %s2342_s17, %s267_s16, %s2578_s20, %s2578_s20, %s2577_s12  }
  0x71   : > { %p2579_p5 = scmp.ne.s32.totalorder %s2572_s29, 0 }
  0x72   : > { %s2378_s30 = sand.u32 (!%p2579_p5), 1, %s2136_s22   ;;  %p2580_p8 = scmp.ne.s32.totalorder (!%p2579_p5), %s2570_s27, 0 }
  0x73   : > { %289 = sbr.rel (%p2579_p5) target bundleno = 2660 (0xa64), region = 44  ;;  %s1655_s8 = sshll.u32 (!%p2579_p5), %s2378_s30, 3 }
  0x74   : > { %s292_s10 = scalar_lea.sflag (!%p2579_p5), [#allocation3], %s2378_s30  ;;  %s2384_s7 = scalar_lea.vmem (!%p2579_p5), [#allocation2], %s1655_s8 }
  0x78   : > { %2111 = dma.done.wait (%p2580_p8), %s292_s10, 128  }
  0x79   : > { %2113 = vsyncadd (%p2580_p8), %s292_s10, 4294967168  ;;  %s300_s29 = sand.u32 1, %s2219_s25   ;;  %s1656_s17 = sshll.u32 %s2378_s30, 4 }
  0x7a   : > { %s301_s2 = scalar_lea.sflag [#allocation6], %s300_s29  ;;  %s304_s16 = scalar_lea.vmem [#allocation5], %s1656_s17 }
  0x7b   : > { %2115 = dma.done.wait (%p2580_p8), %s301_s2, 256  }
  0x7c   : > { %2117 = vsyncadd (%p2580_p8), %s301_s2, 4294967040  ;;  %p2581_p2 = scmp.eq.s32.totalorder %s2219_s25, 0 }
  0x7e   : > { %2119 = dma.done.wait (%p2581_p2), [#allocation6], 512   ;;  %p2582_p3 = pmov %p2581_p2 }
  0x7f   : > { %p2583_p7 = pmov %p2581_p2 }
  0x80   : > { %2121 = vsyncadd (%p2582_p3), [#allocation6], 4294966784 }
  0x81   : > { %2123 = dma.done.wait (%p2583_p7), [#allocation9], 768   ;;  %p2584_p1 = pmov %p2581_p2 }
  0x82   : > { %v2153_v0 = vmov 0.0   ;;  %vm2154_vm0 = vmmov 0   ;;  %v432_v1 = vld [vmem:[#allocation8 + $0x8] sm:$0xff]  ;;  %v356_v2 = vld [vmem:[#allocation7 + $0x18] sm:$0xff]  ;;  %v431_v3 = vld [vmem:[#allocation8] sm:$0xff]  ;;  %vm433_vm1 = vcmask 130048  }
  0x83   : > { %2125 = vsyncadd (%p2584_p1), [#allocation9], 4294966528  ;;  %1731 = vmatprep.subr.mxu0 %v2153_v0  ;;  %1739 = vmatprep.mubr.msk.f32.mxu0 %vm2154_vm0, %v2153_v0  ;;  %v351_v4 = vld [vmem:[%s304_s16] sm:$0xff]  ;;  %v352_v6 = vld [vmem:[%s304_s16 + $0x8] sm:$0xff]  ;;  %vm357_vm2 = vcmask 261120   ;;  %vm519_vm3 = vcmask 64512  }
  0x84   : > { %1742 = vmatprep.subr.mxu1 %v432_v1  ;;  %1732 = vmatpush3.msra.mxu0 %v356_v2  ;;  %v355_v5 = vld [vmem:[#allocation7 + $0x10] sm:$0xff]  ;;  %v354_v7 = vld [vmem:[#allocation7 + $0x8] sm:$0xff]  ;;  %v353_v8 = vld [vmem:[#allocation7] sm:$0xff]  ;;  %s2155_s27 = smov 120   ;;  %s2156_s14 = smov 112  }
  0x85   : > { %1743 = vmatpush3.msra.mxu1 %v432_v1  ;;  %1733 = vmatprep.subr.mxu0 %v2153_v0  ;;  %v350_v9 = vld [vmem:[%s2384_s7] sm:$0xff]  ;;  %s2157_s18 = smov 104   ;;  %s2158_s15 = smov 96  }
  0x86   : > { %1744 = vmatprep.subr.mxu1 %v431_v3  ;;  %1746 = vmatprep.mubr.msk.f32.mxu1 %vm433_vm1, %v351_v4  ;;  %v515_v30 = vld [vmem:[#allocation10] sm:$0xff]  ;;  %s2159_s19 = smov 80   ;;  %v516_v48 = vld [vmem:[#allocation10 + $0x8] sm:$0xff]  ;;  %s2160_s26 = smov 88  }
  0x87   : > { %1745 = vmatpush3.msra.mxu1 %v431_v3  ;;  %1734 = vmatpush3.msra.mxu0 %v355_v5  ;;  %s2161_s12 = smov 72   ;;  %s1686_s7 = sshll.u32 %s2219_s25, 7 }
  0x88   : > { %1747 = vmatmul.mubr.msk.f32.vlgmr.msra.gmra.mxu1 %vm433_vm1, %v352_v6  ;;  %1735 = vmatprep.subr.mxu0 %v2153_v0  ;;  %s349_s29 = scalar_lea.vmem [#allocation11], %s1655_s8  ;;  %p2585_p9 = scmp.ne.s32.totalorder %s2575_s13, 0 }
  0x89   : > { %1736 = vmatpush3.msra.mxu0 %v354_v7  ;;  %1749 = vmatprep.subr.mxu1 %v2153_v0  ;;  %s1522_s17 = sshll.u32 %s349_s29, 4  ;;  %s2162_s25 = smov [#allocation11]   ;;  %s1523_s17 = int_to_ptr.vmem [resolvable:$true] %s1522_s17 }
  0x8a   : > { %1737 = vmatprep.subr.mxu0 %v2153_v0  ;;  %1753 = vmatprep.mubr.msk.f32.mxu1 %vm2154_vm0, %v2153_v0 }
  0x8b   : > { %1738 = vmatpush3.msra.mxu0 %v353_v8 }
  0x8c   : > { %1740 = vmatmul.mubr.msk.f32.vlgmr.msra.gmra.mxu0 %vm357_vm2, %v350_v9  ;;  %1756 = vmatprep.subr.mxu0 %v2153_v0 }
  0x8d   : > { %1760 = vmatprep.mubr.msk.f32.mxu0 %vm2154_vm0, %v2153_v0 }
 0x148   : > { %v2420_v10 = vpop.f32.mrf.mxu1 }
 0x149   : > { %612 = vrot.lane.b32.xlu1 %v2420_v10, %s2155_s27  ;;  %1750 = vmatpush3.xpose.msk.msra.mxu1 %vm519_vm3, %v2420_v10 }
 0x14a   : > { %1751 = vmatprep.subr.mxu1 %v2153_v0  ;;  %v2426_v11 = vpop.f32.mrf.mxu1 }
 0x14c   : > { %v427_v12 = vpop.f32.mrf.mxu0 }
 0x14d   : > { %610 = vrot.lane.b32.xlu1 %v2426_v11, %s2155_s27  ;;  %1752 = vmatpush3.xpose.msk.msra.mxu1 %vm519_vm3, %v2426_v11 }
 0x14e   : > { %v1741_v13 = vpop.f32.mrf.mxu0  ;;  %1770 = vmatprep.subr.mxu1 %v2153_v0 }
 0x150   : > { %1754 = vmatmul.mubr.msk.f32.vlgmr.msra.gmra.mxu1 %vm519_vm3, %v427_v12 }
 0x151   : > { %691 = vrot.lane.b32.xlu1 %v2426_v11, %s2156_s14  ;;  %1774 = vmatprep.mubr.msk.f32.mxu1 %vm2154_vm0, %v2153_v0 }
 0x155   : > { %689 = vrot.lane.b32.xlu1 %v427_v12, %s2155_s27  ;;  %s1520_s27 = scalar_lea.hbm %s2562_s6, %s1686_s7 }
 0x1bb   : > { %v613_v14 = vpop.permute.xlu1 %612 }
 0x1bc   : > { %1757 = vmatpush3.msra.mxu0 %v613_v14 }
 0x1bd   : > { %1758 = vmatprep.subr.mxu0 %v2153_v0 }
 0x1bf   : > { %v611_v15 = vpop.permute.xlu1 %610 }
 0x1c0   : > { %1759 = vmatpush3.msra.mxu0 %v611_v15 }
 0x1c1   : > { %1763 = vmatprep.subr.mxu0 %v2153_v0 }
 0x1c3   : > { %v692_v28 = vpop.permute.xlu1 %691 }
 0x1c7   : > { %v690_v29 = vpop.permute.xlu1 %689 }
 0x210   : > { %v595_v16 = vpop.f32.mrf.mxu1 }
 0x211   : > { %v599_v17 = vsel %vm433_vm1, %v595_v16, -inf }
 0x212   : > { %600 = vmax.xlane.f32.xlu0 %v599_v17  ;;  %v1755_v18 = vpop.f32.mrf.mxu1 }
 0x213   : > { %v517_v18 = vld [vmem:[#allocation10 + $0x10] sm:$0xff] }
 0x29b   : > { %v601_v19 = vpop.xlane.xlu0 %600 }
 0x29c   : > { %v602_v20 = vsub.f32 %v595_v16, %v601_v19 }
 0x29e   : > { %v603_v21 = vmul.f32 1.442695, %v602_v20 }
 0x2a0   : > { %1918 = vpow2.f32 %v603_v21 }
 0x2ad   : > { %v1919_v22 = vpop.eup %1918 }
 0x2ae   : > { %v605_v23 = vsel %vm433_vm1, %v1919_v22, 0.0 }
 0x2af   : > { %606 = vadd.xlane.f32.xlu0 %v605_v23 }
 0x2c5   : > { %693 = vrot.lane.b32.xlu0 %v2420_v10, %s2156_s14 }
 0x338   : > { %v607_v24 = vpop.xlane.xlu0 %606 }
 0x339   : > { %1920 = vrcp.f32 %v607_v24 }
 0x33c   : > { %v694_v27 = vpop.permute.xlu0 %693 }
 0x346   : > { %v1921_v25 = vpop.eup %1920 }
 0x347   : > { %v609_v26 = vmul.f32 %v1921_v25, %v1919_v22  ;;  %v518_v25 = vld [vmem:[#allocation10 + $0x18] sm:$0xff] }
 0x349   : > { %1761 = vmatmul.mubr.msk.f32.vlgmr.msra.gmra.mxu0 %vm433_vm1, %v609_v26 }
 0x34a   : > { %1764 = vmatpush3.xpose.msk.msra.mxu0 %vm519_vm3, %v694_v27  ;;  %1767 = vmatprep.mubr.msk.f32.mxu0 %vm2154_vm0, %v2153_v0 }
 0x34b   : > { %1765 = vmatprep.subr.mxu0 %v2153_v0 }
 0x34e   : > { %1766 = vmatpush3.xpose.msk.msra.mxu0 %vm519_vm3, %v692_v28 }
 0x34f   : > { %1782 = vmatprep.subr.mxu0 %v2153_v0 }
 0x351   : > { %1768 = vmatmul.mubr.msk.f32.vlgmr.msra.gmra.mxu0 %vm519_vm3, %v690_v29 }
 0x352   : > { %1784 = vmatprep.mubr.msk.f32.mxu0 %vm2154_vm0, %v2153_v0  ;;  %1783 = vmatpush3.msra.mxu0 %v515_v30 }
 0x353   : > { %1794 = vmatprep.subr.mxu0 %v2153_v0 }
 0x409   : > { %v685_v31 = vpop.f32.mrf.mxu0 }
 0x40a   : > { %1785 = vmatmul.mubr.msk.f32.vlgmr.msra.gmra.mxu0 %vm519_vm3, %v685_v31 }
 0x40b   : > { %v1762_v32 = vpop.f32.mrf.mxu0  ;;  %1798 = vmatprep.mubr.msk.f32.mxu0 %vm2154_vm0, %v2153_v0 }
 0x411   : > { %v767_v33 = vpop.f32.mrf.mxu0 }
 0x412   : > { %v771_v34 = vsel %vm433_vm1, %v767_v33, -inf }
 0x413   : > { %772 = vmax.xlane.f32.xlu1 %v771_v34  ;;  %v1769_v35 = vpop.f32.mrf.mxu0 }
 0x424   : > { %784 = vrot.lane.b32.xlu1 %v2420_v10, %s2157_s18 }
 0x428   : > { %1011 = vrot.lane.b32.xlu1 %v2420_v10, %s2158_s15 }
 0x42c   : > { %1009 = vrot.lane.b32.xlu1 %v2426_v11, %s2158_s15  ;;  %s2072_s15 = sshll.u32 %s2162_s25, 4  ;;  %s2073_s15 = int_to_ptr.vmem [resolvable:$false] %s2072_s15 }
 0x42d   : > { %s2074_s8 = scalar_lea.vmem %s2073_s15, 256  ;;  %p2075_p11 = scmp.lt.s32.totalorder %s1523_s17, %s2073_s15 }
 0x430   : > { %1007 = vrot.lane.b32.xlu1 %v427_v12, %s2156_s14  ;;  %s1509_s14 = scalar_lea.sflag [#allocation4], %s2378_s30 }
 0x434   : > { %1257 = vrot.lane.b32.xlu1 %v2420_v10, %s2159_s19 }
 0x438   : > { %1253 = vrot.lane.b32.xlu1 %v427_v12, %s2157_s18 }
 0x49c   : > { %v773_v36 = vpop.xlane.xlu1 %772 }
 0x49d   : > { %v774_v37 = vsub.f32 %v767_v33, %v773_v36  ;;  %v1684_v33 = vld [vmem:[%s2561_s5] ss:$0 sm:$0xff] }
 0x49f   : > { %v775_v38 = vmul.f32 1.442695, %v774_v37 }
 0x4a0   : > { %v785_v39 = vpop.permute.xlu1 %784 }
 0x4a1   : > { %1922 = vpow2.f32 %v775_v38  ;;  %1771 = vmatpush3.msra.mxu1 %v785_v39 }
 0x4a2   : > { %1772 = vmatprep.subr.mxu1 %v2153_v0 }
 0x4a4   : > { %v1012_v49 = vpop.permute.xlu1 %1011 }
 0x4a8   : > { %v1010_v50 = vpop.permute.xlu1 %1009 }
 0x4ac   : > { %v1008_v53 = vpop.permute.xlu1 %1007 }
 0x4ae   : > { %v1923_v40 = vpop.eup %1922 }
 0x4af   : > { %v777_v41 = vsel %vm433_vm1, %v1923_v40, 0.0 }
 0x4b0   : > { %778 = vadd.xlane.f32.xlu0 %v777_v41  ;;  %v1258_v54 = vpop.permute.xlu1 %1257 }
 0x4b4   : > { %v1254_v56 = vpop.permute.xlu1 %1253 }
 0x4c6   : > { %782 = vrot.lane.b32.xlu0 %v2426_v11, %s2157_s18  ;;  %s2068_s18 = scalar_lea.vmem %s1523_s17, 128 }
 0x4c7   : > { %p2069_p12 = scmp.ne.s32.totalorder %s1523_s17, %s2068_s18  ;;  %p2076_p10 = scmp.lt.s32.totalorder %s2074_s8, %s2068_s18 }
 0x4c9   : > { %p2070_p13 = pnand %p2069_p12, %p2585_p9  ;;  %p2077_p4 = por %p2076_p10, %p2075_p11 }
 0x4ca   : > { %1255 = vrot.lane.b32.xlu0 %v2426_v11, %s2159_s19  ;;  %v2467_v42 = vpop.f32.mrf.mxu0 }
 0x4cb   : > { %p2071_p0 = pneg %p2070_p13 }
 0x4cc   : > { %v1786_v43 = vpop.f32.mrf.mxu0 }
 0x4cd   : > { %p2078_p6 = pnand %p2077_p4, %p2071_p0 }
 0x539   : > { %v779_v44 = vpop.xlane.xlu0 %778 }
 0x53a   : > { %1924 = vrcp.f32 %v779_v44 }
 0x53d   : > { %v783_v45 = vpop.permute.xlu0 %782 }
 0x53e   : > { %1773 = vmatpush3.msra.mxu1 %v783_v45 }
 0x53f   : > { %1777 = vmatprep.subr.mxu1 %v2153_v0 }
 0x541   : > { %v1256_v55 = vpop.permute.xlu0 %1255 }
 0x547   : > { %v1925_v46 = vpop.eup %1924 }
 0x548   : > { %v781_v47 = vmul.f32 %v1925_v46, %v1923_v40 }
 0x54a   : > { %1775 = vmatmul.mubr.msk.f32.vlgmr.msra.gmra.mxu1 %vm433_vm1, %v781_v47 }
 0x54b   : > { %1778 = vmatpush3.msra.mxu1 %v516_v48  ;;  %1779 = vmatprep.mubr.msk.f32.mxu1 %vm2154_vm0, %v2153_v0 }
 0x54c   : > { %1787 = vmatprep.subr.mxu1 %v2153_v0 }
 0x60a   : > { %v857_v51 = vpop.f32.mrf.mxu1 }
 0x60b   : > { %1780 = vmatmul.mubr.msk.f32.vlgmr.msra.gmra.mxu1 %vm519_vm3, %v857_v51 }
 0x60c   : > { %1788 = vmatpush3.xpose.msk.msra.mxu1 %vm519_vm3, %v1012_v49  ;;  %v1776_v52 = vpop.f32.mrf.mxu1  ;;  %1791 = vmatprep.mubr.msk.f32.mxu1 %vm2154_vm0, %v2153_v0 }
 0x60d   : > { %1789 = vmatprep.subr.mxu1 %v2153_v0 }
 0x610   : > { %1790 = vmatpush3.xpose.msk.msra.mxu1 %vm519_vm3, %v1010_v50 }
 0x611   : > { %1806 = vmatprep.subr.mxu1 %v2153_v0 }
 0x613   : > { %1792 = vmatmul.mubr.msk.f32.vlgmr.msra.gmra.mxu1 %vm519_vm3, %v1008_v53 }
 0x614   : > { %1807 = vmatpush3.xpose.msk.msra.mxu1 %vm519_vm3, %v1258_v54  ;;  %1810 = vmatprep.mubr.msk.f32.mxu1 %vm2154_vm0, %v2153_v0 }
 0x615   : > { %1808 = vmatprep.subr.mxu1 %v2153_v0 }
 0x618   : > { %1809 = vmatpush3.xpose.msk.msra.mxu1 %vm519_vm3, %v1256_v55 }
 0x61b   : > { %1811 = vmatmul.mubr.msk.f32.vlgmr.msra.gmra.mxu1 %vm519_vm3, %v1254_v56 }
 0x6cb   : > { %v2488_v57 = vpop.f32.mrf.mxu1 }
 0x6cc   : > { %v1004_v26 = vadd.f32 %v2467_v42, %v2488_v57 }
 0x6cd   : > { %v1781_v58 = vpop.f32.mrf.mxu1 }
 0x6d3   : > { %v1085_v59 = vpop.f32.mrf.mxu1 }
 0x6d4   : > { %v1089_v60 = vsel %vm433_vm1, %v1085_v59, -inf }
 0x6d5   : > { %1090 = vmax.xlane.f32.xlu0 %v1089_v60  ;;  %v1793_v61 = vpop.f32.mrf.mxu1 }
 0x6db   : > { %v1331_v62 = vpop.f32.mrf.mxu1 }
 0x6dc   : > { %v1335_v1 = vsel %vm433_vm1, %v1331_v62, -inf }
 0x6dd   : > { %v1812_v63 = vpop.f32.mrf.mxu1 }
 0x6eb   : > { %1102 = vrot.lane.b32.xlu0 %v2420_v10, %s2160_s26 }
 0x70a   : > { %1336 = vmax.xlane.f32.xlu0 %v1335_v1 }
 0x720   : > { %1348 = vrot.lane.b32.xlu0 %v2420_v10, %s2161_s12 }
 0x75e   : > { %v1091_v2 = vpop.xlane.xlu0 %1090 }
 0x75f   : > { %v1092_v3 = vsub.f32 %v1085_v59, %v1091_v2 }
 0x761   : > { %v1093_v4 = vmul.f32 1.442695, %v1092_v3 }
 0x762   : > { %v1103_v5 = vpop.permute.xlu0 %1102 }
 0x763   : > { %1926 = vpow2.f32 %v1093_v4  ;;  %1795 = vmatpush3.msra.mxu0 %v1103_v5 }
 0x764   : > { %1796 = vmatprep.subr.mxu0 %v2153_v0 }
 0x770   : > { %v1927_v6 = vpop.eup %1926 }
 0x771   : > { %v1095_v7 = vsel %vm433_vm1, %v1927_v6, 0.0 }
 0x772   : > { %1096 = vadd.xlane.f32.xlu1 %v1095_v7 }
 0x783   : > { %1100 = vrot.lane.b32.xlu1 %v2426_v11, %s2160_s26 }
 0x793   : > { %v1337_v8 = vpop.xlane.xlu0 %1336 }
 0x794   : > { %v1338_v9 = vsub.f32 %v1331_v62, %v1337_v8 }
 0x796   : > { %v1339_v12 = vmul.f32 1.442695, %v1338_v9 }
 0x797   : > { %v1349_v21 = vpop.permute.xlu0 %1348 }
 0x798   : > { %1928 = vpow2.f32 %v1339_v12 }
 0x7a5   : > { %v1929_v13 = vpop.eup %1928 }
 0x7a6   : > { %v1341_v10 = vsel %vm433_vm1, %v1929_v13, 0.0 }
 0x7a7   : > { %1342 = vadd.xlane.f32.xlu1 %v1341_v10 }
 0x7b8   : > { %1346 = vrot.lane.b32.xlu1 %v2426_v11, %s2161_s12 }
 0x7fb   : > { %v1097_v14 = vpop.xlane.xlu1 %1096 }
 0x7fc   : > { %1930 = vrcp.f32 %v1097_v14 }
 0x7ff   : > { %v1101_v15 = vpop.permute.xlu1 %1100 }
 0x800   : > { %1797 = vmatpush3.msra.mxu0 %v1101_v15 }
 0x801   : > { %1801 = vmatprep.subr.mxu0 %v2153_v0 }
 0x809   : > { %v1931_v16 = vpop.eup %1930 }
 0x80a   : > { %v1099_v17 = vmul.f32 %v1931_v16, %v1927_v6 }
 0x80c   : > { %1799 = vmatmul.mubr.msk.f32.vlgmr.msra.gmra.mxu0 %vm433_vm1, %v1099_v17 }
 0x80d   : > { %1802 = vmatpush3.msra.mxu0 %v517_v18  ;;  %1803 = vmatprep.mubr.msk.f32.mxu0 %vm2154_vm0, %v2153_v0 }
 0x80e   : > { %1813 = vmatprep.subr.mxu0 %v2153_v0 }
 0x830   : > { %v1343_v19 = vpop.xlane.xlu1 %1342 }
 0x831   : > { %1932 = vrcp.f32 %v1343_v19 }
 0x834   : > { %v1347_v23 = vpop.permute.xlu1 %1346 }
 0x83e   : > { %v1933_v11 = vpop.eup %1932 }
 0x83f   : > { %v1345_v24 = vmul.f32 %v1933_v11, %v1929_v13 }
 0x8cc   : > { %v1175_v20 = vpop.f32.mrf.mxu0 }
 0x8cd   : > { %1804 = vmatmul.mubr.msk.f32.vlgmr.msra.gmra.mxu0 %vm519_vm3, %v1175_v20 }
 0x8ce   : > { %1814 = vmatpush3.msra.mxu0 %v1349_v21  ;;  %v1800_v22 = vpop.f32.mrf.mxu0  ;;  %1817 = vmatprep.mubr.msk.f32.mxu0 %vm2154_vm0, %v2153_v0 }
 0x8cf   : > { %1815 = vmatprep.subr.mxu0 %v2153_v0 }
 0x8d0   : > { %1816 = vmatpush3.msra.mxu0 %v1347_v23 }
 0x8d1   : > { %1818 = vmatmul.mubr.msk.f32.vlgmr.msra.gmra.mxu0 %vm433_vm1, %v1345_v24  ;;  %1820 = vmatprep.subr.mxu0 %v2153_v0 }
 0x8d2   : > { %1822 = vmatprep.mubr.msk.f32.mxu0 %vm2154_vm0, %v2153_v0  ;;  %1821 = vmatpush3.msra.mxu0 %v518_v25 }
 0x98d   : > { %v1248_v27 = vpop.f32.mrf.mxu0 }
 0x98e   : > { %v1252_v28 = vadd.f32 %v1248_v27, %v1004_v26 }
 0x98f   : > { %v1805_v29 = vpop.f32.mrf.mxu0 }
 0x991   : > { %v1421_v30 = vpop.f32.mrf.mxu0 }
 0x992   : > { %1823 = vmatmul.mubr.msk.f32.vlgmr.msra.gmra.mxu0 %vm519_vm3, %v1421_v30 }
 0x993   : > { %v1819_v31 = vpop.f32.mrf.mxu0 }
 0xa52   : > { %v1494_v32 = vpop.f32.mrf.mxu0 }
 0xa53   : > { %v1498_v0 = vadd.f32 %v1494_v32, %v1252_v28 }
 0xa54   : > { %v1824_v34 = vpop.f32.mrf.mxu0 }
 0xa55   : > { %v1506_v35 = vadd.f32 %v1684_v33, %v1498_v0 }
 0xa57   : > { %1507 = vst.msk [vmem:[%s349_s29] sm:$0xff] %vm357_vm2, %v1506_v35 }
 0xa58   : > { %2081 = shalt.err (!%p2078_p6)
}
 0xa59   : > { %s2082_s19 = scalar_lea.hbm %s1520_s27, 128  ;;  %s2086_s12 = scalar_lea.hbm %s2562_s6, 256 }
 0xa5a   : > { %p2083_p5 = scmp.ne.s32.totalorder %s1520_s27, %s2082_s19  ;;  %p2087_p3 = scmp.lt.s32.totalorder %s1520_s27, %s2562_s6 }
 0xa5b   : > { %p2088_p7 = scmp.lt.s32.totalorder %s2086_s12, %s2082_s19 }
 0xa5c   : > { %p2084_p8 = pnand %p2083_p5, %p2585_p9 }
 0xa5d   : > { %p2089_p1 = por %p2088_p7, %p2087_p3 }
 0xa5e   : > { %p2085_p2 = pneg %p2084_p8 }
 0xa60   : > { %p2090_p12 = pnand %p2089_p1, %p2085_p2 }
 0xa62   : > { %2093 = shalt.err (!%p2090_p12)
}
 0xa63   : > { %1841 = dma.vmem_to_hbm [thread:$0]  (%p2585_p9), %s1523_s17, 128, %s1520_s27, %s1509_s14  }
 0xa64 PF: > { %s1534_s7 = sand.u32 1, %s2132_s21   ;;  %p2586_p13 = scmp.ne.s32.totalorder %s2571_s28, 0 }
 0xa65   : > { %p2587_p0 = scmp.ge.s32.totalorder %s2144_s24, 2  ;;  %s1535_s29 = scalar_lea.sflag [#allocation4], %s1534_s7 }
 0xa67   : > { %p1861_p11 = pnand %p2587_p0, %p2586_p13 }
 0xa69   : > { %p1862_p10 = pneg %p1861_p11 }
 0xa6b   : > { %2127 = dma.done.wait (%p1862_p10), %s1535_s29, 128  }
 0xa6c   : > { %2129 = vsyncadd (%p1862_p10), %s1535_s29, 4294967168  ;;  %p23_p4 = scmp.ge.s32.totalorder %s2287_s9, 4   ;;  %s2588_s21 = smov %s2136_s22 }
 0xa6d   : > { %s2589_s22 = smov %s2140_s23  ;;  %s2590_s23 = smov %s2297_s11 }
 0xa6e   : > { %s2591_s24 = smov %s2287_s9  ;;  %25 = sbr.rel (!%p23_p4) target bundleno = 10 (0xa), region = 114 }
 0xa73   :  { %1540 = vsyncpa [#allocation3], 1 }
 0xa74   :  { %1542 = vsyncpa [#allocation3 + $0x1], 1 }
 0xa75   :  { %1543 = vsyncpa [#allocation6], 1 }
 0xa76   :  { %1545 = vsyncpa [#allocation6 + $0x1], 1 }
 0xa77   :  { %1546 = vsyncpa [#allocation9], 1 }
 0xa78   :  { %1547 = vsyncpa [#allocation4], 1 }
 0xa79   :  { %1549 = vsyncpa [#allocation4 + $0x1], 1 }

</bundles_post_ra>
